<compile_context>
chip_gen: v6e
topology: v6e:2x2x1
jax: 0.10.0
libtpu: 0.0.40
codegen_flags: <defaults>
</compile_context>

<pallas_src>
import functools

import jax
import jax.numpy as jnp
import numpy as np
from jax.experimental import pallas as pl
from jax.experimental.pallas import tpu as pltpu


def _upsampler_kernel(x_ref, xh_ref, w_ref, shift_ref, o_ref):
    """One (batch element, H-tile) step of ConvTranspose2d(s=2) + folded BN + ReLU.

    x_ref:     (1, TH, W, Cin)   input rows [h*TH, h*TH + TH)        (compute dtype)
    xh_ref:    (1, 1,  W, Cin)   halo row h*TH + TH (clamped index; selected to zero on
                                 the last H tile, where it lies past the image)
    w_ref:     (4*Cin, 4*Cout)   fused tap matrix, BN scale folded in (compute dtype).
                                 Row blocks: input offset (dy, dx) = (0,0),(1,0),(0,1),(1,1).
                                 Col blocks: output phase (py, px) = (0,0),(0,1),(1,0),(1,1).
    shift_ref: (1, 4*Cout)       conv bias + BN shift, tiled per phase (f32).
    o_ref:     (1, TH*W, 4*Cout) phased output, f32; col (2*py+px)*Cout + c of flat
                                 pixel i*W + j holds out[2i+py, 2j+px, c].
    """
    TH, W, Cin = x_ref.shape[1], x_ref.shape[2], x_ref.shape[3]
    dt = x_ref.dtype

    x = x_ref[0]                                               # rows i       (TH, W, Cin)
    # +1 row halo; on the last H tile that row does not exist -> select zeros.
    # (select, not multiply: NaN/Inf in the clamped row cannot propagate.)
    is_last = pl.program_id(1) == pl.num_programs(1) - 1
    h0 = xh_ref[0]                                             # (1, W, Cin)
    halo = jnp.where(is_last, jnp.zeros_like(h0), h0)

    # Column (j+1) shift, done once at Cin width on x and the 1-row halo; the row (i+1)
    # shift afterwards is a cheap leading-axis concat (vreg reindexing, no XLU work).
    zc_x = jnp.zeros((TH, 1, Cin), dt)
    zc_h = jnp.zeros((1, 1, Cin), dt)
    x_rt = jnp.concatenate([x[:, 1:, :], zc_x], axis=1)        # cols j+1, col W-1 -> 0
    h_rt = jnp.concatenate([halo[:, 1:, :], zc_h], axis=1)

    x_dn = jnp.concatenate([x[1:], halo], axis=0)              # rows i+1     (TH, W, Cin)
    x_rt_dn = jnp.concatenate([x_rt[1:], h_rt], axis=0)        # rows i+1, cols j+1

    # One 4-way lane concat -> single fused MXU contraction over (offset, Cin).
    # Offset order must match the w_big row blocks: (0,0),(1,0),(0,1),(1,1).
    x_cat = jnp.concatenate([x, x_dn, x_rt, x_rt_dn], axis=-1).reshape(TH * W, 4 * Cin)

    # One matmul covers all taps and all 4 output phases (BN scale folded into w_ref).
    p = jnp.dot(x_cat, w_ref[...], preferred_element_type=jnp.float32)   # (TH*W, 4*Cout)

    # Single lane-dense store (4*Cout lanes); bias/BN shift + ReLU epilogue.
    o_ref[0] = jnp.maximum(p + shift_ref[...], 0.0)


def _vmem_bytes(th, W, Cin, Cout, in_itemsize):
    """Estimated VMEM footprint of one pipelined grid step (review's sizing formula)."""
    inp = 2 * th * W * Cin * in_itemsize               # double-buffered input block
    halo = 2 * W * Cin * in_itemsize                   # double-buffered halo row
    wgt = 2 * (4 * Cin) * (4 * Cout) * in_itemsize     # tap matrix
    outb = 2 * th * W * (4 * Cout) * 4                 # double-buffered f32 output block
    chain = 3 * th * W * (4 * Cin) * in_itemsize       # x_cat + shifted-view working set
    acc = 2 * th * W * (4 * Cout) * 4                  # matmul result + epilogue temp
    return inp + halo + wgt + outb + chain + acc


def _choose_th(N, H, W, Cin, Cout, in_itemsize,
               budget_bytes=20 * 1024 * 1024, min_steps=4):
    """Largest divisor of H whose footprint fits the VMEM budget; then back off (not
    below 16 rows) if the grid would leave a v7x TensorCore with <2 steps."""
    divs = [d for d in range(H, 0, -1) if H % d == 0]
    fits = lambda d: _vmem_bytes(d, W, Cin, Cout, in_itemsize) <= budget_bytes
    th = next((d for d in divs if fits(d)), 1)
    if N * (H // th) < min_steps:
        for d in divs:
            if d < th and d >= 16 and fits(d) and N * (H // d) >= min_steps:
                th = d
                break
    return th


def _fold_params(w_t, conv_bias, gamma, beta, run_mean, run_var, eps, compute_dtype):
    """Build the fused (4*Cin, 4*Cout) tap matrix (BN scale folded) and the per-column
    shift (conv bias + BN shift), tiled over the 4 output phases."""
    Cin, Cout = w_t.shape[0], w_t.shape[1]
    scale = (gamma / jnp.sqrt(run_var + eps)).astype(jnp.float32)          # (Cout,)
    shift = (beta + (conv_bias - run_mean) * scale).astype(jnp.float32)    # (Cout,)

    # out[2i+py, 2j+px] += in[i+dy, j+dx] @ w[py - 2*dy + 1, px - 2*dx + 1] (valid taps)
    w_khwio = jnp.transpose(w_t, (2, 3, 0, 1)).astype(jnp.float32)         # (ky,kx,Cin,Cout)
    zero_tap = jnp.zeros((Cin, Cout), jnp.float32)

    def tap(py, px, dy, dx):
        ky, kx = py - 2 * dy + 1, px - 2 * dx + 1
        return w_khwio[ky, kx] if (0 <= ky < 3 and 0 <= kx < 3) else zero_tap

    offsets = [(0, 0), (1, 0), (0, 1), (1, 1)]   # row blocks == x_cat concat order
    phases = [(0, 0), (0, 1), (1, 0), (1, 1)]    # col blocks == output phase order
    w_big = jnp.concatenate(
        [jnp.concatenate([tap(py, px, dy, dx) for (py, px) in phases], axis=1)
         for (dy, dx) in offsets], axis=0)                                  # (4Cin, 4Cout)
    w_big = (w_big * jnp.tile(scale, 4)[None, :]).astype(compute_dtype)     # fold BN scale
    shift_big = jnp.tile(shift, 4)[None, :]                                 # (1, 4Cout) f32
    return w_big, shift_big


def _upsampler_phased(x_nhwc, w_big, shift_big):
    """Core Pallas call: channels-last input -> phased output (N, H*W, 4*Cout)."""
    N, H, W, Cin = x_nhwc.shape
    Cout4 = w_big.shape[1]
    TH = _choose_th(N, H, W, Cin, Cout4 // 4, x_nhwc.dtype.itemsize)
    num_h = H // TH

    cost = pl.CostEstimate(
        flops=2 * N * H * W * (4 * Cin) * Cout4,
        transcendentals=0,
        bytes_accessed=(x_nhwc.size * x_nhwc.dtype.itemsize
                        + w_big.size * w_big.dtype.itemsize
                        + N * H * W * Cout4 * 4))

    return pl.pallas_call(
        _upsampler_kernel,
        out_shape=jax.ShapeDtypeStruct((N, H * W, Cout4), jnp.float32),
        grid=(N, num_h),
        in_specs=[
            pl.BlockSpec((1, TH, W, Cin), lambda n, h: (n, h, 0, 0)),
            pl.BlockSpec((1, 1, W, Cin),
                         lambda n, h: (n, jnp.minimum((h + 1) * TH, H - 1), 0, 0)),
            pl.BlockSpec((4 * Cin, Cout4), lambda n, h: (0, 0)),
            pl.BlockSpec((1, Cout4), lambda n, h: (0, 0)),
        ],
        out_specs=pl.BlockSpec((1, TH * W, Cout4), lambda n, h: (n, h, 0)),
        compiler_params=pltpu.CompilerParams(
            dimension_semantics=("parallel", "parallel"),
            vmem_limit_bytes=32 * 1024 * 1024),
        cost_estimate=cost,
    )(x_nhwc, x_nhwc, w_big, shift_big)


@functools.partial(jax.jit, static_argnames=("eps", "compute_dtype"))
def upsampler_block(x_nchw, w_t, conv_bias, gamma, beta, run_mean, run_var,
                    *, eps=1e-3, compute_dtype=jnp.bfloat16):
    """UpsamplerBlock forward.  x_nchw: (N, Cin, H, W); w_t: (Cin, Cout, 3, 3) (PyTorch
    ConvTranspose2d layout).  Returns (N, Cout, 2H, 2W) f32."""
    N, Cin, H, W = x_nchw.shape
    Cout = w_t.shape[1]

    w_big, shift_big = _fold_params(w_t, conv_bias, gamma, beta, run_mean, run_var,
                                    eps, compute_dtype)

    # Layout glue only to honor the NCHW module interface; the bf16 cast is fused into
    # this single input pass.  See module-level TODO: a channels-last pipeline calls
    # _upsampler_phased directly and skips both of these HBM passes.
    x_nhwc = jnp.transpose(x_nchw, (0, 2, 3, 1)).astype(compute_dtype)     # (N, H, W, Cin)

    out_ph = _upsampler_phased(x_nhwc, w_big, shift_big)                   # (N, H*W, 4Cout)

    # out_ph[n, i*W+j, (2*py+px)*Cout + c] == out[n, c, 2i+py, 2j+px]; the phase
    # interleave is fused with the (interface-mandated) NCHW conversion: one transpose.
    out = (out_ph.reshape(N, H, W, 2, 2, Cout)
                 .transpose(0, 5, 1, 3, 2, 4)
                 .reshape(N, Cout, 2 * H, 2 * W))
    return out


def _reference(x_nchw, w_t, conv_bias, gamma, beta, run_mean, run_var, eps=1e-3):
    # ConvTranspose2d == input-dilated conv with spatially flipped, IO-transposed kernel.
    w_conv = jnp.flip(w_t, axis=(2, 3)).transpose(1, 0, 2, 3)              # (Cout,Cin,3,3)
    y = jax.lax.conv_general_dilated(
        x_nchw.astype(jnp.float32), w_conv.astype(jnp.float32),
        window_strides=(1, 1), padding=((1, 2), (1, 2)), lhs_dilation=(2, 2),
        dimension_numbers=("NCHW", "OIHW", "NCHW"),
        precision=jax.lax.Precision.HIGHEST)
    y = y + conv_bias[None, :, None, None]
    y = (y - run_mean[None, :, None, None]) / jnp.sqrt(run_var[None, :, None, None] + eps)
    y = y * gamma[None, :, None, None] + beta[None, :, None, None]
    return jnp.maximum(y, 0.0)


if __name__ == "__main__":
    def run_case(case_idx, N, Cin, Cout, H, W, compute_dtype, rtol, atol):
        key = jax.random.fold_in(jax.random.PRNGKey(0), case_idx)
        ks = jax.random.split(key, 7)
        x = jax.random.normal(ks[0], (N, Cin, H, W), dtype=jnp.float32)
        w_t = jax.random.normal(ks[1], (Cin, Cout, 3, 3), dtype=jnp.float32) * 0.1
        conv_bias = jax.random.normal(ks[2], (Cout,), dtype=jnp.float32) * 0.1
        gamma = jax.random.uniform(ks[3], (Cout,), minval=0.5, maxval=1.5,
                                   dtype=jnp.float32)
        beta = jax.random.normal(ks[4], (Cout,), dtype=jnp.float32) * 0.1
        run_mean = jax.random.normal(ks[5], (Cout,), dtype=jnp.float32) * 0.1
        run_var = jax.random.uniform(ks[6], (Cout,), minval=0.5, maxval=1.5,
                                     dtype=jnp.float32)

        out = jax.block_until_ready(
            upsampler_block(x, w_t, conv_bias, gamma, beta, run_mean, run_var,
                            compute_dtype=compute_dtype))
        ref = _reference(x, w_t, conv_bias, gamma, beta, run_mean, run_var)
        assert out.shape == (N, Cout, 2 * H, 2 * W), out.shape
        np.testing.assert_allclose(np.asarray(out), np.asarray(ref),
                                   rtol=rtol, atol=atol)

    # ERFNet-like channel counts, default bf16 MXU path (f32 accumulation):
    # 4*Cout = 256 -> fully lane-dense output stores.
    run_case(0, N=2, Cin=32, Cout=64, H=16, W=16,
             compute_dtype=jnp.bfloat16, rtol=2e-2, atol=5e-2)
    # Tiny-channel config on the f32 path (stores lane-masked since 4*Cout < 128).
    run_case(1, N=2, Cin=4, Cout=8, H=16, W=16,
             compute_dtype=jnp.float32, rtol=1e-2, atol=1e-2)

    print("KERNEL_OK")
</pallas_src>

<mosaic_0001>
module attributes {stable_mosaic.version = 11 : i64} {
  func.func @_upsampler_kernel(%arg0: i32, %arg1: i32, %arg2: memref<1x16x16x32xbf16, #tpu.memory_space<vmem>>, %arg3: memref<1x1x16x32xbf16, #tpu.memory_space<vmem>>, %arg4: memref<128x256xbf16, #tpu.memory_space<vmem>>, %arg5: memref<1x256xf32, #tpu.memory_space<vmem>>, %arg6: memref<1x256x256xf32, #tpu.memory_space<vmem>>) attributes {dimension_semantics = [#tpu.dimension_semantics<parallel>, #tpu.dimension_semantics<parallel>], iteration_bounds = array<i64: 2, 1>, scalar_prefetch = 0 : i64, scratch_operands = 0 : i64, tpu.core_type = #tpu.core_type<tc>, window_params = [{transform_indices = @transform_0, window_bounds = array<i64: 1, 16, 16, 32>}, {transform_indices = @transform_1, window_bounds = array<i64: 1, 1, 16, 32>}, {pipeline_mode = #tpu.pipeline_mode<synchronous>, transform_indices = @transform_2, window_bounds = array<i64: 128, 256>}, {pipeline_mode = #tpu.pipeline_mode<synchronous>, transform_indices = @transform_3, window_bounds = array<i64: 1, 256>}, {transform_indices = @transform_4, window_bounds = array<i64: 1, 256, 256>}]} {
    %c0 = arith.constant 0 : index
    %c0_0 = arith.constant 0 : index
    %c0_1 = arith.constant 0 : index
    %c0_2 = arith.constant 0 : index
    %0 = vector.load %arg2[%c0, %c0_0, %c0_1, %c0_2] : memref<1x16x16x32xbf16, #tpu.memory_space<vmem>>, vector<1x16x16x32xbf16>
    %1 = vector.shape_cast %0 : vector<1x16x16x32xbf16> to vector<16x16x32xbf16>
    %c0_i32 = arith.constant 0 : i32
    %2 = arith.cmpi eq, %arg1, %c0_i32 : i32
    %c0_3 = arith.constant 0 : index
    %c0_4 = arith.constant 0 : index
    %c0_5 = arith.constant 0 : index
    %c0_6 = arith.constant 0 : index
    %3 = vector.load %arg3[%c0_3, %c0_4, %c0_5, %c0_6] : memref<1x1x16x32xbf16, #tpu.memory_space<vmem>>, vector<1x1x16x32xbf16>
    %4 = vector.shape_cast %3 : vector<1x1x16x32xbf16> to vector<1x16x32xbf16>
    %cst = arith.constant 0.000000e+00 : bf16
    %5 = vector.broadcast %cst : bf16 to vector<1x16x32xbf16>
    %6 = arith.select %2, %5, %4 : vector<1x16x32xbf16>
    %cst_7 = arith.constant 0.000000e+00 : bf16
    %7 = vector.broadcast %cst_7 : bf16 to vector<16x1x32xbf16>
    %cst_8 = arith.constant 0.000000e+00 : bf16
    %8 = vector.broadcast %cst_8 : bf16 to vector<1x1x32xbf16>
    %9 = vector.extract_strided_slice %1 {offsets = [0, 1, 0], sizes = [16, 15, 32], strides = [1, 1, 1]} : vector<16x16x32xbf16> to vector<16x15x32xbf16>
    %10 = tpu.concatenate %9, %7 in 1 : vector<16x15x32xbf16>, vector<16x1x32xbf16> -> vector<16x16x32xbf16>
    %11 = vector.extract_strided_slice %6 {offsets = [0, 1, 0], sizes = [1, 15, 32], strides = [1, 1, 1]} : vector<1x16x32xbf16> to vector<1x15x32xbf16>
    %12 = tpu.concatenate %11, %8 in 1 : vector<1x15x32xbf16>, vector<1x1x32xbf16> -> vector<1x16x32xbf16>
    %13 = vector.extract_strided_slice %1 {offsets = [1, 0, 0], sizes = [15, 16, 32], strides = [1, 1, 1]} : vector<16x16x32xbf16> to vector<15x16x32xbf16>
    %14 = tpu.concatenate %13, %6 in 0 : vector<15x16x32xbf16>, vector<1x16x32xbf16> -> vector<16x16x32xbf16>
    %15 = vector.extract_strided_slice %10 {offsets = [1, 0, 0], sizes = [15, 16, 32], strides = [1, 1, 1]} : vector<16x16x32xbf16> to vector<15x16x32xbf16>
    %16 = tpu.concatenate %15, %12 in 0 : vector<15x16x32xbf16>, vector<1x16x32xbf16> -> vector<16x16x32xbf16>
    %17 = tpu.concatenate %1, %14, %10, %16 in 2 : vector<16x16x32xbf16>, vector<16x16x32xbf16>, vector<16x16x32xbf16>, vector<16x16x32xbf16> -> vector<16x16x128xbf16>
    %18 = vector.shape_cast %17 : vector<16x16x128xbf16> to vector<256x128xbf16>
    %c0_9 = arith.constant 0 : index
    %c0_10 = arith.constant 0 : index
    %19 = vector.load %arg4[%c0_9, %c0_10] : memref<128x256xbf16, #tpu.memory_space<vmem>>, vector<128x256xbf16>
    %cst_11 = arith.constant dense<0.000000e+00> : vector<256x256xf32>
    %20 = tpu.matmul %18, %19, %cst_11 {dimension_numbers = #tpu.dot_dimension_numbers<[1], [0], [0], [1], [0, 0, 1, 1], [], []>} : vector<256x128xbf16>, vector<128x256xbf16>, vector<256x256xf32> -> vector<256x256xf32>
    %c0_12 = arith.constant 0 : index
    %c0_13 = arith.constant 0 : index
    %21 = vector.load %arg5[%c0_12, %c0_13] : memref<1x256xf32, #tpu.memory_space<vmem>>, vector<1x256xf32>
    %22 = vector.broadcast %21 : vector<1x256xf32> to vector<256x256xf32>
    %23 = arith.addf %20, %22 : vector<256x256xf32>
    %cst_14 = arith.constant 0.000000e+00 : f32
    %24 = vector.broadcast %cst_14 : f32 to vector<256x256xf32>
    %25 = arith.maximumf %23, %24 : vector<256x256xf32>
    %c0_15 = arith.constant 0 : index
    %c0_16 = arith.constant 0 : index
    %c0_17 = arith.constant 0 : index
    %26 = vector.load %arg6[%c0_15, %c0_16, %c0_17] : memref<1x256x256xf32, #tpu.memory_space<vmem>>, vector<1x256x256xf32>
    %27 = vector.shape_cast %26 : vector<1x256x256xf32> to vector<256x256xf32>
    %28 = vector.shape_cast %25 : vector<256x256xf32> to vector<1x256x256xf32>
    tpu.vector_store %arg6[%c0_15, %c0_16, %c0_17], %28 {strides = array<i32>} : memref<1x256x256xf32, #tpu.memory_space<vmem>>, vector<1x256x256xf32>,
    return
  }
  func.func @transform_0(%arg0: i32, %arg1: i32) -> (i32, i32, i32, i32) {
    %c0_i32 = arith.constant 0 : i32
    %c0_i32_0 = arith.constant 0 : i32
    %c0_i32_1 = arith.constant 0 : i32
    return %arg0, %arg1, %c0_i32, %c0_i32_0 : i32, i32, i32, i32
  }
  func.func @transform_1(%arg0: i32, %arg1: i32) -> (i32, i32, i32, i32) {
    %c1_i32 = arith.constant 1 : i32
    %0 = arith.addi %arg1, %c1_i32 : i32
    %c16_i32 = arith.constant 16 : i32
    %1 = arith.muli %0, %c16_i32 : i32
    %c15_i32 = arith.constant 15 : i32
    %2 = arith.minsi %1, %c15_i32 : i32
    %c0_i32 = arith.constant 0 : i32
    %c0_i32_0 = arith.constant 0 : i32
    %c0_i32_1 = arith.constant 0 : i32
    return %arg0, %2, %c0_i32, %c0_i32_0 : i32, i32, i32, i32
  }
  func.func @transform_2(%arg0: i32, %arg1: i32) -> (i32, i32) {
    %c0_i32 = arith.constant 0 : i32
    %c0_i32_0 = arith.constant 0 : i32
    %c0_i32_1 = arith.constant 0 : i32
    return %c0_i32, %c0_i32_0 : i32, i32
  }
  func.func @transform_3(%arg0: i32, %arg1: i32) -> (i32, i32) {
    %c0_i32 = arith.constant 0 : i32
    %c0_i32_0 = arith.constant 0 : i32
    %c0_i32_1 = arith.constant 0 : i32
    return %c0_i32, %c0_i32_0 : i32, i32
  }
  func.func @transform_4(%arg0: i32, %arg1: i32) -> (i32, i32, i32) {
    %c0_i32 = arith.constant 0 : i32
    %c0_i32_0 = arith.constant 0 : i32
    return %arg0, %arg1, %c0_i32 : i32, i32, i32
  }
}

</mosaic_0001>

<bundles_post_ra>
// kernel: mul.7
= control target key start
LH: loop header
LB: loop body
LE: loop exit
PB: predicated region body
PF: predicated region fallthrough
CT: control target
= control target key end

     0   :  { %s7_s8 = smov 3  ;;  %vm9_vm0 = vcmask 523264   ;;  %s27_s9 = smov 64   ;;  %vm16_vm1 = vcmask 1048064   ;;  %s44_s0 = inlined_call_operand.vmem [shape: f32[4,64], index: 0, kind: input, shape index: {}]   ;;  %s45_s1 = inlined_call_operand.vmem [shape: f32[256], index: 1, kind: output, shape index: {}]  }
   0x1   :  { %v5_v0 = vld [vmem:[%s44_s0] sm:$0xf]  ;;  %s12_s0 = smov 3 }
   0x2   :  { %6 = vst [vmem:[#allocation1] sm:$0xf] %v5_v0 }
   0x9   :  { %v13_v1 = vld [vmem:[#allocation1 + $0x1] ss:$2 sm:%s12_s0]   ;;  %v8_v2 = vld [vmem:[#allocation1] ss:$2 sm:%s7_s8]  }
   0xa   :  { %14 = vrot.lane.b32.xlu0 %v13_v1, %s27_s9  ;;  %10 = vst.msk [vmem:[#allocation0] sm:$0x3] %vm9_vm0, %v8_v2  }
  0x7c   :  { %v15_v3 = vpop.permute.xlu0 %14  }
  0x7d   :  { %17 = vst.msk [vmem:[#allocation0] sm:$0x3] %vm16_vm1, %v15_v3  }
  0x84   :  { %v22_v4 = vld [vmem:[#allocation0] sm:$0x3] }
  0x85   :  { %25 = vst [vmem:[%s45_s1] sm:$0x3] %v22_v4 }

// kernel: tile.19
= control target key start
LH: loop header
LB: loop body
LE: loop exit
PB: predicated region body
PF: predicated region fallthrough
CT: control target
= control target key end

     0   :  { %s7_s8 = smov 3  ;;  %vm9_vm0 = vcmask 523264   ;;  %s34_s9 = smov 64   ;;  %vm16_vm1 = vcmask 1048064   ;;  %s54_s0 = inlined_call_operand.vmem [shape: f32[4,64], index: 0, kind: input, shape index: {}]   ;;  %s55_s1 = inlined_call_operand.vmem [shape: f32[1,256], index: 1, kind: output, shape index: {}]  }
   0x1   :  { %v5_v0 = vld [vmem:[%s54_s0] sm:$0xf]  ;;  %s12_s0 = smov 3 }
   0x2   :  { %6 = vst [vmem:[#allocation1] sm:$0xf] %v5_v0 }
   0x9   :  { %v13_v1 = vld [vmem:[#allocation1 + $0x1] ss:$2 sm:%s12_s0]   ;;  %v8_v2 = vld [vmem:[#allocation1] ss:$2 sm:%s7_s8]  }
   0xa   :  { %14 = vrot.lane.b32.xlu0 %v13_v1, %s34_s9  ;;  %10 = vst.msk [vmem:[#allocation0] ss:$8 sm:$0x3] %vm9_vm0, %v8_v2  }
  0x7c   :  { %v15_v3 = vpop.permute.xlu0 %14  }
  0x7d   :  { %17 = vst.msk [vmem:[#allocation0] ss:$8 sm:$0x3] %vm16_vm1, %v15_v3  }
  0x84   :  { %v22_v4 = vld [vmem:[#allocation0] sm:$0x1]  ;;  %v27_v5 = vld [vmem:[#allocation0 + $0x8] sm:$0x1] }
  0x85   :  { %25 = vst [vmem:[%s55_s1] sm:$0x1] %v22_v4  ;;  %32 = vst [vmem:[%s55_s1 + $0x1] sm:$0x1] %v27_v5 }

// kernel: tile.18
= control target key start
LH: loop header
LB: loop body
LE: loop exit
PB: predicated region body
PF: predicated region fallthrough
CT: control target
= control target key end

     0   :  { %s22_s0 = inlined_call_operand.vmem [shape: f32[64], index: 0, kind: input, shape index: {}]   ;;  %s23_s1 = inlined_call_operand.vmem [shape: f32[4,64], index: 1, kind: output, shape index: {}]  }
   0x1   :  { %v4_v0 = vld [vmem:[%s22_s0] ss:$0 sm:$0xff] }
   0x2   :  { %5 = vst [vmem:[%s23_s1] sm:$0xf] %v4_v0 }

// kernel: upsampler_block.1
= control target key start
LH: loop header
LB: loop body
LE: loop exit
PB: predicated region body
PF: predicated region fallthrough
CT: control target
= control target key end

     0   :  { %s1547_s15 = smov 0   ;;  %s1549_s16 = smov 0   ;;  %s2040_s0 = inlined_call_operand.vmem [shape: bf16[2,16,16,32], index: 0, kind: input, shape index: {}, may-alias: {0,1}]   ;;  %s2041_s1 = inlined_call_operand.vmem [shape: bf16[2,16,16,32], index: 1, kind: input, shape index: {}, may-alias: {0,1}]   ;;  %s2042_s2 = inlined_call_operand.vmem [shape: bf16[128,256], index: 2, kind: input, shape index: {}]   ;;  %s2043_s3 = inlined_call_operand.vmem [shape: f32[1,256], index: 3, kind: input, shape index: {}]   ;;  %s2044_s4 = inlined_call_operand.vmem [shape: f32[2,256,256], index: 4, kind: output, shape index: {}]  }
   0x1   :  { %s1551_s17 = smov 0  }
   0x2 LB: > { %s26_s1 = sadd.s32 1, %s1512_s16  ;;  %p1364_p0 = scmp.ge.s32.totalorder %s1516_s17, 1  ;;  %s1516_s17 = sphi %s1551_s17, %s14_s17   ;;  %s1512_s16 = sphi %s1549_s16, %s2048_s16   ;;  %s1508_s15 = sphi %s1547_s15, %s2047_s15  }
   0x3   : > { %p28_p1 = scmp.ge.s32.totalorder %s26_s1, 2  ;;  %p216_p2 = scmp.lt.s32.totalorder %s1516_s17, 3 }
   0x5   : > { %s2050_s1 = smov (%p28_p1, %s26_s1), 0  ;;  %p217_p3 = pnand %p1364_p0, %p216_p2 }
   0x6   : > { %p266_p4 = scmp.lt.s32.totalorder (!%p217_p3), %s1508_s15, 1  ;;  %s1519_s8 = smov (!%p217_p3), 32  }
   0x7   : > { %220 = sbr.rel (%p217_p3) target bundleno = 432 (0x1b0), region = 36  ;;  %s1520_s9 = smov (!%p217_p3), 64  }
   0x8   : > { %s1521_s10 = smov (!%p217_p3), 96  }
   0xc   : > { %v1518_v0 = vmov 0   ;;  %s2052_s15 = smov (!%p266_p4, %s1508_s15), 1  ;;  %v1470_v1 = vld [vmem:[%s2042_s2 + $0x74] ss:$8 sps:$4 sm:$0xff]   ;;  %v1472_v2 = vld [vmem:[%s2042_s2 + $0x70] ss:$8 sps:$4 sm:$0xff]  }
   0xd   : > { %954 = vmatprep.mubr.bf16.mxu0 %v1518_v0  ;;  %1034 = vmatprep.mubr.bf16.mxu1 %v1518_v0  ;;  %v1473_v3 = vld [vmem:[%s2042_s2 + $0x64] ss:$8 sps:$4 sm:$0xff]   ;;  %s1406_s24 = sshll.u32 %s2052_s15, 7  ;;  %v1475_v4 = vld [vmem:[%s2042_s2 + $0x60] ss:$8 sps:$4 sm:$0xff]   ;;  %vm553_vm1 = vcmask 1047552  }
   0xe   : > { %922 = vmatprep.subr.bf16.mxu0 %v1470_v1  ;;  %1410 = vmatprep.subr.bf16.mxu1 %v1470_v1  ;;  %s1585_s29 = scalar_lea.vmem %s2040_s0, %s1406_s24  ;;  %vm554_vm0 = vsmask.f32 7424  ;;  %v1476_v5 = vld [vmem:[%s2042_s2 + $0x54] ss:$8 sps:$4 sm:$0xff]   ;;  %v1478_v8 = vld [vmem:[%s2042_s2 + $0x50] ss:$8 sps:$4 sm:$0xff]  }
   0xf   : > { %923 = vmatpush1.bf16.msra.mxu0 %v1472_v2  ;;  %1418 = vmatpush1.bf16.msra.mxu1 %v1472_v2  ;;  %v1591_v6 = vld [vmem:[%s1585_s29 + $0x8] sm:$0xff]   ;;  %v1594_v7 = vld [vmem:[%s1585_s29 + $0x50] sm:$0xff]   ;;  %v1607_v10 = vld [vmem:[%s1585_s29] sm:$0xff]   ;;  %vm699_vm3 = vcmask 261120   ;;  %vm732_vm4 = vcmask 523264   ;;  %vm765_vm5 = vcmask 785408  }
  0x10   : > { %924 = vmatprep.subr.bf16.mxu0 %v1473_v3  ;;  %1411 = vmatprep.subr.bf16.mxu1 %v1473_v3  ;;  %v1602_v9 = vld [vmem:[%s1585_s29 + $0x48] sm:$0xff]   ;;  %v435_v11 = vshll.u32 %v1591_v6, 16  ;;  %v1611_v12 = vld [vmem:[%s1585_s29 + $0x10] sm:$0xff]   ;;  %v433_v13 = vshrl.u32 %v1591_v6, 16  ;;  %v426_v14 = vshrl.u32 %v1607_v10, 16  ;;  %v428_v15 = vshll.u32 %v1607_v10, 16  ;;  %vm1625_vm2 = vmand %vm553_vm1, %vm554_vm0 }
  0x11   : > { %586 = vrot.lane.b32.xlu0 %v1591_v6, %s1519_s8  ;;  %604 = vrot.lane.b32.xlu1 %v1594_v7, %s1519_s8  ;;  %v1619_v16 = vld [vmem:[%s1585_s29 + $0x40] sm:$0xff]   ;;  %v491_v18 = vshll.u32 %v1602_v9, 16  ;;  %v442_v19 = vshll.u32 %v1611_v12, 16  ;;  %v489_v26 = vshrl.u32 %v1602_v9, 16  ;;  %v440_v29 = vshrl.u32 %v1611_v12, 16  ;;  %v1647_v38 = vld [vmem:[%s1585_s29 + $0x18] sm:$0xff]  }
  0x12   : > { %v437_v17 = vrot.slane %v435_v11, 1  ;;  %v430_v20 = vrot.slane %v428_v15, 1  ;;  %v482_v22 = vshrl.u32 %v1619_v16, 16  ;;  %v484_v23 = vshll.u32 %v1619_v16, 16  ;;  %v1660_v45 = vld [vmem:[%s1585_s29 + $0x58] sm:$0xff]   ;;  %v1683_v55 = vld [vmem:[%s1585_s29 + $0x20] sm:$0xff]  }
  0x13   : > { %925 = vmatpush1.bf16.msra.mxu0 %v1475_v4  ;;  %1419 = vmatpush1.bf16.msra.mxu1 %v1475_v4  ;;  %v493_v27 = vrot.slane %v491_v18, 1  ;;  %v444_v30 = vrot.slane %v442_v19, 1  ;;  %v498_v35 = vshll.u32 %v1594_v7, 16  ;;  %v496_v40 = vshrl.u32 %v1594_v7, 16  ;;  %v1479_v46 = vld [vmem:[%s2042_s2 + $0x44] ss:$8 sps:$4 sm:$0xff]  }
  0x14   : > { %926 = vmatprep.subr.bf16.mxu0 %v1476_v5  ;;  %1412 = vmatprep.subr.bf16.mxu1 %v1476_v5  ;;  %v438_v24 = vor.u32 %v437_v17, %v433_v13  ;;  %v431_v25 = vor.u32 %v430_v20, %v426_v14  ;;  %v486_v28 = vrot.slane %v484_v23, 1  ;;  %v449_v43 = vshll.u32 %v1647_v38, 16  ;;  %v1481_v49 = vld [vmem:[%s2042_s2 + $0x40] ss:$8 sps:$4 sm:$0xff]   ;;  %v1482_v50 = vld [vmem:[%s2042_s2 + $0x34] ss:$8 sps:$4 sm:$0xff]  }
  0x15   : > { %602 = vrot.lane.b32.xlu0 %v1602_v9, %s1519_s8  ;;  %v494_v34 = vor.u32 %v493_v27, %v489_v26  ;;  %v445_v37 = vor.u32 %v444_v30, %v440_v29  ;;  %v500_v41 = vrot.slane %v498_v35, 1  ;;  %v447_v47 = vshrl.u32 %v1647_v38, 16  ;;  %v1484_v53 = vld [vmem:[%s2042_s2 + $0x30] ss:$8 sps:$4 sm:$0xff]   ;;  %v1485_v56 = vld [vmem:[%s2042_s2 + $0x24] ss:$8 sps:$4 sm:$0xff]  }
  0x16   : > { %v556_v31 = vsel %vm1625_vm2, %v431_v25, 0  ;;  %v557_v32 = vsel %vm1625_vm2, %v438_v24, 0  ;;  %v487_v33 = vor.u32 %v486_v28, %v482_v22  ;;  %v451_v48 = vrot.slane %v449_v43, 1  ;;  %v1487_v59 = vld [vmem:[%s2042_s2 + $0x20] ss:$8 sps:$4 sm:$0xff]   ;;  %v1745_v29 = vld [vmem:[%s1585_s29 + $0x30] sm:$0xff]  }
  0x17   : > { %927 = vmatpush1.bf16.msra.mxu0 %v1478_v8  ;;  %1420 = vmatpush1.bf16.msra.mxu1 %v1478_v8  ;;  %v565_v39 = vsel %vm1625_vm2, %v494_v34, 0  ;;  %v558_v42 = vsel %vm1625_vm2, %v445_v37, 0  ;;  %v501_v44 = vor.u32 %v500_v41, %v496_v40  ;;  %v505_v52 = vshll.u32 %v1660_v45, 16  ;;  %v1488_v62 = vld [vmem:[%s2042_s2 + $0x14] ss:$8 sps:$4 sm:$0xff]   ;;  %v1703_v1 = vld [vmem:[%s1585_s29 + $0x60] sm:$0xff]  }
  0x18   : > { %634 = vrot.lane.b32.xlu1 %v556_v31, %s1520_s9  ;;  %v1643_v36 = vsel %vm1625_vm2, %v487_v33, 0  ;;  %928 = vmatprep.subr.bf16.mxu0 %v1479_v46  ;;  %v452_v54 = vor.u32 %v451_v48, %v447_v47  ;;  %v503_v57 = vshrl.u32 %v1660_v45, 16  ;;  %v456_v61 = vshll.u32 %v1683_v55, 16  ;;  %v1490_v2 = vld [vmem:[%s2042_s2 + $0x10] ss:$8 sps:$4 sm:$0xff]   ;;  %v1723_v15 = vld [vmem:[%s1585_s29 + $0x28] sm:$0xff]  }
  0x19   : > { %588 = vrot.lane.b32.xlu0 %v1611_v12, %s1519_s8  ;;  %v566_v51 = vsel %vm1625_vm2, %v501_v44, 0  ;;  %1413 = vmatprep.subr.bf16.mxu1 %v1479_v46  ;;  %v507_v58 = vrot.slane %v505_v52, 1  ;;  %v454_v3 = vshrl.u32 %v1683_v55, 16  ;;  %v1491_v5 = vld [vmem:[%s2042_s2 + $0x4] ss:$8 sps:$4 sm:$0xff]   ;;  %v512_v11 = vshll.u32 %v1703_v1, 16 }
  0x1a   : > { %v559_v60 = vsel %vm1625_vm2, %v452_v54, 0  ;;  %v458_v4 = vrot.slane %v456_v61, 1  ;;  %v1493_v13 = vld [vmem:[%s2042_s2] ss:$8 sps:$4 sm:$0xff]   ;;  %v510_v17 = vshrl.u32 %v1703_v1, 16  ;;  %v463_v20 = vshll.u32 %v1723_v15, 16 }
  0x1b   : > { %929 = vmatpush1.bf16.msra.mxu0 %v1481_v49  ;;  %1421 = vmatpush1.bf16.msra.mxu1 %v1481_v49  ;;  %v508_v63 = vor.u32 %v507_v58, %v503_v57  ;;  %v514_v18 = vrot.slane %v512_v11, 1  ;;  %v1734_v23 = vld [vmem:[%s1585_s29 + $0x68] sm:$0xff]   ;;  %v461_v24 = vshrl.u32 %v1723_v15, 16  ;;  %v470_v33 = vshll.u32 %v1745_v29, 16  ;;  %v1756_v35 = vld [vmem:[%s1585_s29 + $0x70] sm:$0xff]   ;;  %v1767_v43 = vld [vmem:[%s1585_s29 + $0x38] sm:$0xff]  }
  0x1c   : > { %650 = vrot.lane.b32.xlu1 %v1643_v36, %s1520_s9  ;;  %930 = vmatprep.subr.bf16.mxu0 %v1482_v50  ;;  %v459_v14 = vor.u32 %v458_v4, %v454_v3  ;;  %v465_v25 = vrot.slane %v463_v20, 1  ;;  %v519_v27 = vshll.u32 %v1734_v23, 16  ;;  %v517_v30 = vshrl.u32 %v1734_v23, 16 }
  0x1d   : > { %667 = vrot.lane.b32.xlu0 %v557_v32, %s1521_s10  ;;  %1414 = vmatprep.subr.bf16.mxu1 %v1482_v50  ;;  %v567_v8 = vsel %vm1625_vm2, %v508_v63, 0  ;;  %v515_v22 = vor.u32 %v514_v18, %v510_v17  ;;  %v468_v37 = vshrl.u32 %v1745_v29, 16  ;;  %v526_v41 = vshll.u32 %v1756_v35, 16  ;;  %v1778_v50 = vld [vmem:[%s1585_s29 + $0x78] sm:$0xff]  }
  0x1e   : > { %v560_v19 = vsel %vm1625_vm2, %v459_v14, 0  ;;  %v466_v28 = vor.u32 %v465_v25, %v461_v24  ;;  %v521_v31 = vrot.slane %v519_v27, 1  ;;  %v524_v44 = vshrl.u32 %v1756_v35, 16 }
  0x1f   : > { %931 = vmatpush1.bf16.msra.mxu0 %v1484_v53  ;;  %1422 = vmatpush1.bf16.msra.mxu1 %v1484_v53  ;;  %v568_v26 = vsel %vm1625_vm2, %v515_v22, 0  ;;  %v528_v46 = vrot.slane %v526_v41, 1  ;;  %v477_v48 = vshll.u32 %v1767_v43, 16  ;;  %v533_v54 = vshll.u32 %v1778_v50, 16 }
  0x20   : > { %683 = vrot.lane.b32.xlu1 %v565_v39, %s1521_s10  ;;  %932 = vmatprep.subr.bf16.mxu0 %v1485_v56  ;;  %v522_v34 = vor.u32 %v521_v31, %v517_v30  ;;  %v531_v57 = vshrl.u32 %v1778_v50, 16  ;;  %v1387_v61 = vcombine.low %v1518_v0, %v1518_v0 }
  0x21   : > { %636 = vrot.lane.b32.xlu0 %v557_v32, %s1520_s9  ;;  %1415 = vmatprep.subr.bf16.mxu1 %v1485_v56  ;;  %v561_v32 = vsel %vm1625_vm2, %v466_v28, 0  ;;  %v529_v49 = vor.u32 %v528_v46, %v524_v44  ;;  %v479_v52 = vrot.slane %v477_v48, 1  ;;  %v535_v58 = vrot.slane %v533_v54, 1 }
  0x22   : > { %v569_v40 = vsel %vm1625_vm2, %v522_v34, 0  ;;  %v580_v63 = vshll.u32 %v1387_v61, 16 }
  0x23   : > { %933 = vmatpush1.bf16.msra.mxu0 %v1487_v59  ;;  %1423 = vmatpush1.bf16.msra.mxu1 %v1487_v59  ;;  %v570_v53 = vsel %vm1625_vm2, %v529_v49, 0 }
  0x24   : > { %652 = vrot.lane.b32.xlu1 %v565_v39, %s1520_s9  ;;  %934 = vmatprep.subr.bf16.mxu0 %v1488_v62  ;;  %v472_v39 = vrot.slane %v470_v33, 1  ;;  %v582_v3 = vrot.slane %v580_v63, 1 }
  0x25   : > { %669 = vrot.lane.b32.xlu0 %v558_v42, %s1521_s10  ;;  %1416 = vmatprep.subr.bf16.mxu1 %v1488_v62 }
  0x27   : > { %935 = vmatpush1.bf16.msra.mxu0 %v1490_v2  ;;  %1424 = vmatpush1.bf16.msra.mxu1 %v1490_v2  ;;  %v578_v2 = vshrl.u32 %v1387_v61, 16 }
  0x28   : > { %685 = vrot.lane.b32.xlu1 %v566_v51, %s1521_s10  ;;  %936 = vmatprep.subr.bf16.mxu0 %v1491_v5 }
  0x29   : > { %590 = vrot.lane.b32.xlu0 %v1647_v38, %s1519_s8  ;;  %1417 = vmatprep.subr.bf16.mxu1 %v1491_v5  ;;  %v583_v4 = vor.u32 %v582_v3, %v578_v2 }
  0x2b   : > { %937 = vmatpush1.bf16.msra.mxu0 %v1493_v13  ;;  %1425 = vmatpush1.bf16.msra.mxu1 %v1493_v13  ;;  %v585_v5 = vsel %vm1625_vm2, %v583_v4, 0 }
  0x2c   : > { %606 = vrot.lane.b32.xlu1 %v1660_v45, %s1519_s8 }
  0x2d   : > { %638 = vrot.lane.b32.xlu0 %v558_v42, %s1520_s9  ;;  %v473_v42 = vor.u32 %v472_v39, %v468_v37 }
  0x2f   : > { %v562_v47 = vsel %vm1625_vm2, %v473_v42, 0 }
  0x30   : > { %654 = vrot.lane.b32.xlu1 %v566_v51, %s1520_s9  ;;  %v475_v51 = vshrl.u32 %v1767_v43, 16 }
  0x31   : > { %671 = vrot.lane.b32.xlu0 %v559_v60, %s1521_s10 }
  0x32   : > { %v480_v56 = vor.u32 %v479_v52, %v475_v51 }
  0x34   : > { %687 = vrot.lane.b32.xlu1 %v567_v8, %s1521_s10  ;;  %v563_v59 = vsel %vm1625_vm2, %v480_v56, 0 }
  0x35   : > { %592 = vrot.lane.b32.xlu0 %v1683_v55, %s1519_s8 }
  0x38   : > { %608 = vrot.lane.b32.xlu1 %v1703_v1, %s1519_s8 }
  0x39   : > { %640 = vrot.lane.b32.xlu0 %v559_v60, %s1520_s9  ;;  %v536_v60 = vor.u32 %v535_v58, %v531_v57 }
  0x3b   : > { %v571_v62 = vsel %vm1625_vm2, %v536_v60, 0 }
  0x3c   : > { %656 = vrot.lane.b32.xlu1 %v567_v8, %s1520_s9 }
  0x3d   : > { %673 = vrot.lane.b32.xlu0 %v560_v19, %s1521_s10 }
  0x40   : > { %689 = vrot.lane.b32.xlu1 %v568_v26, %s1521_s10 }
  0x41   : > { %594 = vrot.lane.b32.xlu0 %v1723_v15, %s1519_s8 }
  0x44   : > { %610 = vrot.lane.b32.xlu1 %v1734_v23, %s1519_s8 }
  0x45   : > { %642 = vrot.lane.b32.xlu0 %v560_v19, %s1520_s9 }
  0x48   : > { %658 = vrot.lane.b32.xlu1 %v568_v26, %s1520_s9 }
  0x49   : > { %675 = vrot.lane.b32.xlu0 %v561_v32, %s1521_s10 }
  0x4c   : > { %691 = vrot.lane.b32.xlu1 %v569_v40, %s1521_s10 }
  0x4d   : > { %596 = vrot.lane.b32.xlu0 %v1745_v29, %s1519_s8 }
  0x50   : > { %612 = vrot.lane.b32.xlu1 %v1756_v35, %s1519_s8 }
  0x51   : > { %644 = vrot.lane.b32.xlu0 %v561_v32, %s1520_s9 }
  0x54   : > { %660 = vrot.lane.b32.xlu1 %v569_v40, %s1520_s9 }
  0x55   : > { %677 = vrot.lane.b32.xlu0 %v562_v47, %s1521_s10 }
  0x58   : > { %693 = vrot.lane.b32.xlu1 %v570_v53, %s1521_s10 }
  0x59   : > { %598 = vrot.lane.b32.xlu0 %v1767_v43, %s1519_s8 }
  0x5c   : > { %614 = vrot.lane.b32.xlu1 %v1778_v50, %s1519_s8 }
  0x5d   : > { %646 = vrot.lane.b32.xlu0 %v562_v47, %s1520_s9 }
  0x60   : > { %662 = vrot.lane.b32.xlu1 %v570_v53, %s1520_s9 }
  0x61   : > { %679 = vrot.lane.b32.xlu0 %v563_v59, %s1521_s10 }
  0x64   : > { %695 = vrot.lane.b32.xlu1 %v571_v62, %s1521_s10 }
  0x65   : > { %600 = vrot.lane.b32.xlu0 %v1619_v16, %s1519_s8 }
  0x68   : > { %616 = vrot.lane.b32.xlu1 %v1387_v61, %s1519_s8 }
  0x69   : > { %648 = vrot.lane.b32.xlu0 %v563_v59, %s1520_s9 }
  0x6c   : > { %664 = vrot.lane.b32.xlu1 %v571_v62, %s1520_s9  ;;  %s1409_s9 = sshll.u32 %s2052_s15, 9 }
  0x6d   : > { %681 = vrot.lane.b32.xlu0 %v1643_v36, %s1521_s10  ;;  %s1902_s13 = scalar_lea.vmem %s2044_s4, %s1409_s9 }
  0x70   : > { %697 = vrot.lane.b32.xlu1 %v585_v5, %s1521_s10 }
  0x83   : > { %v587_v8 = vpop.permute.xlu0 %586  ;;  %v605_v11 = vpop.permute.xlu1 %604 }
  0x84   : > { %v701_v18 = vsel %vm699_vm3, %v1607_v10, %v587_v8  ;;  %v719_v33 = vsel %vm699_vm3, %v1602_v9, %v605_v11 }
  0x87   : > { %v603_v13 = vpop.permute.xlu0 %602 }
  0x88   : > { %v717_v24 = vsel %vm699_vm3, %v1619_v16, %v603_v13 }
  0x8a   : > { %v635_v17 = vpop.permute.xlu1 %634 }
  0x8b   : > { %v589_v14 = vpop.permute.xlu0 %588  ;;  %v734_v36 = vsel %vm732_vm4, %v701_v18, %v635_v17 }
  0x8c   : > { %v703_v27 = vsel %vm699_vm3, %v1591_v6, %v589_v14 }
  0x8e   : > { %v651_v21 = vpop.permute.xlu1 %650 }
  0x8f   : > { %v668_v19 = vpop.permute.xlu0 %667  ;;  %v750_v25 = vsel %vm732_vm4, %v717_v24, %v651_v21 }
  0x90   : > { %v767_v20 = vsel %vm765_vm5, %v734_v36, %v668_v19 }
  0x91   : > { %955 = vmatmul.mubr.bf16.vlgmr.msra.gmra.mxu0 %v767_v20 }
  0x92   : > { %964 = vmatprep.mubr.bf16.mxu0 %v1518_v0  ;;  %v684_v26 = vpop.permute.xlu1 %683 }
  0x93   : > { %v637_v22 = vpop.permute.xlu0 %636  ;;  %v791_v10 = vsel %vm765_vm5, %v750_v25, %v684_v26 }
  0x94   : > { %v736_v28 = vsel %vm732_vm4, %v703_v27, %v637_v22  ;;  %1035 = vmatmul.mubr.bf16.vlgmr.msra.gmra.mxu1 %v791_v10 }
  0x95   : > { %1044 = vmatprep.mubr.bf16.mxu1 %v1518_v0 }
  0x96   : > { %v653_v32 = vpop.permute.xlu1 %652 }
  0x97   : > { %v670_v30 = vpop.permute.xlu0 %669  ;;  %v752_v6 = vsel %vm732_vm4, %v719_v33, %v653_v32 }
  0x98   : > { %v770_v31 = vsel %vm765_vm5, %v736_v28, %v670_v30 }
  0x99   : > { %965 = vmatmul.mubr.bf16.gmra.mxu0 %v770_v31 }
  0x9a   : > { %974 = vmatprep.mubr.bf16.mxu0 %v1518_v0  ;;  %v686_v34 = vpop.permute.xlu1 %685 }
  0x9b   : > { %v591_v16 = vpop.permute.xlu0 %590  ;;  %v794_v37 = vsel %vm765_vm5, %v752_v6, %v686_v34 }
  0x9c   : > { %1045 = vmatmul.mubr.bf16.gmra.mxu1 %v794_v37  ;;  %v705_v40 = vsel %vm699_vm3, %v1611_v12, %v591_v16 }
  0x9d   : > { %1054 = vmatprep.mubr.bf16.mxu1 %v1518_v0 }
  0x9e   : > { %v607_v41 = vpop.permute.xlu1 %606 }
  0x9f   : > { %v639_v39 = vpop.permute.xlu0 %638  ;;  %v721_v48 = vsel %vm699_vm3, %v1594_v7, %v607_v41 }
  0xa0   : > { %v738_v42 = vsel %vm732_vm4, %v705_v40, %v639_v39 }
  0xa2   : > { %v655_v47 = vpop.permute.xlu1 %654 }
  0xa3   : > { %v672_v44 = vpop.permute.xlu0 %671  ;;  %v754_v49 = vsel %vm732_vm4, %v721_v48, %v655_v47 }
  0xa4   : > { %v773_v46 = vsel %vm765_vm5, %v738_v42, %v672_v44 }
  0xa5   : > { %975 = vmatmul.mubr.bf16.gmra.mxu0 %v773_v46 }
  0xa6   : > { %984 = vmatprep.mubr.bf16.mxu0 %v1518_v0  ;;  %v688_v51 = vpop.permute.xlu1 %687 }
  0xa7   : > { %v593_v9 = vpop.permute.xlu0 %592  ;;  %v797_v12 = vsel %vm765_vm5, %v754_v49, %v688_v51 }
  0xa8   : > { %1055 = vmatmul.mubr.bf16.gmra.mxu1 %v797_v12  ;;  %v707_v53 = vsel %vm699_vm3, %v1647_v38, %v593_v9  ;;  %v830_v12 = vld [vmem:[%s2043_s3] sm:$0x3] }
  0xa9   : > { %1064 = vmatprep.mubr.bf16.mxu1 %v1518_v0 }
  0xaa   : > { %v609_v54 = vpop.permute.xlu1 %608 }
  0xab   : > { %v641_v52 = vpop.permute.xlu0 %640  ;;  %v723_v60 = vsel %vm699_vm3, %v1660_v45, %v609_v54 }
  0xac   : > { %v740_v56 = vsel %vm732_vm4, %v707_v53, %v641_v52 }
  0xae   : > { %v657_v59 = vpop.permute.xlu1 %656 }
  0xaf   : > { %v674_v57 = vpop.permute.xlu0 %673  ;;  %v756_v61 = vsel %vm732_vm4, %v723_v60, %v657_v59 }
  0xb0   : > { %v776_v58 = vsel %vm765_vm5, %v740_v56, %v674_v57 }
  0xb1   : > { %985 = vmatmul.mubr.bf16.gmra.mxu0 %v776_v58 }
  0xb2   : > { %994 = vmatprep.mubr.bf16.mxu0 %v1518_v0  ;;  %v690_v62 = vpop.permute.xlu1 %689 }
  0xb3   : > { %v595_v7 = vpop.permute.xlu0 %594  ;;  %v800_v38 = vsel %vm765_vm5, %v756_v61, %v690_v62 }
  0xb4   : > { %1065 = vmatmul.mubr.bf16.gmra.mxu1 %v800_v38  ;;  %v709_v2 = vsel %vm699_vm3, %v1683_v55, %v595_v7 }
  0xb5   : > { %1074 = vmatprep.mubr.bf16.mxu1 %v1518_v0 }
  0xb6   : > { %v611_v3 = vpop.permute.xlu1 %610 }
  0xb7   : > { %v643_v63 = vpop.permute.xlu0 %642  ;;  %v725_v13 = vsel %vm699_vm3, %v1703_v1, %v611_v3 }
  0xb8   : > { %v742_v4 = vsel %vm732_vm4, %v709_v2, %v643_v63 }
  0xba   : > { %v659_v11 = vpop.permute.xlu1 %658 }
  0xbb   : > { %v676_v5 = vpop.permute.xlu0 %675  ;;  %v758_v14 = vsel %vm732_vm4, %v725_v13, %v659_v11 }
  0xbc   : > { %v779_v8 = vsel %vm765_vm5, %v742_v4, %v676_v5 }
  0xbd   : > { %995 = vmatmul.mubr.bf16.gmra.mxu0 %v779_v8 }
  0xbe   : > { %1004 = vmatprep.mubr.bf16.mxu0 %v1518_v0  ;;  %v692_v17 = vpop.permute.xlu1 %691 }
  0xbf   : > { %v597_v45 = vpop.permute.xlu0 %596  ;;  %v803_v55 = vsel %vm765_vm5, %v758_v14, %v692_v17 }
  0xc0   : > { %1075 = vmatmul.mubr.bf16.gmra.mxu1 %v803_v55  ;;  %v711_v36 = vsel %vm699_vm3, %v1723_v15, %v597_v45 }
  0xc1   : > { %1084 = vmatprep.mubr.bf16.mxu1 %v1518_v0 }
  0xc2   : > { %v613_v19 = vpop.permute.xlu1 %612 }
  0xc3   : > { %v645_v18 = vpop.permute.xlu0 %644  ;;  %v727_v25 = vsel %vm699_vm3, %v1734_v23, %v613_v19 }
  0xc4   : > { %v744_v20 = vsel %vm732_vm4, %v711_v36, %v645_v18 }
  0xc6   : > { %v661_v24 = vpop.permute.xlu1 %660 }
  0xc7   : > { %v678_v21 = vpop.permute.xlu0 %677  ;;  %v760_v26 = vsel %vm732_vm4, %v727_v25, %v661_v24 }
  0xc8   : > { %v782_v22 = vsel %vm765_vm5, %v744_v20, %v678_v21 }
  0xc9   : > { %1005 = vmatmul.mubr.bf16.gmra.mxu0 %v782_v22 }
  0xca   : > { %1014 = vmatprep.mubr.bf16.mxu0 %v1518_v0  ;;  %v694_v27 = vpop.permute.xlu1 %693 }
  0xcb   : > { %v599_v1 = vpop.permute.xlu0 %598  ;;  %v806_v15 = vsel %vm765_vm5, %v760_v26, %v694_v27 }
  0xcc   : > { %1085 = vmatmul.mubr.bf16.gmra.mxu1 %v806_v15  ;;  %v713_v28 = vsel %vm699_vm3, %v1745_v29, %v599_v1 }
  0xcd   : > { %1094 = vmatprep.mubr.bf16.mxu1 %v1518_v0 }
  0xce   : > { %v615_v30 = vpop.permute.xlu1 %614 }
  0xcf   : > { %v647_v10 = vpop.permute.xlu0 %646  ;;  %v729_v6 = vsel %vm699_vm3, %v1756_v35, %v615_v30 }
  0xd0   : > { %v746_v31 = vsel %vm732_vm4, %v713_v28, %v647_v10 }
  0xd2   : > { %v663_v33 = vpop.permute.xlu1 %662 }
  0xd3   : > { %v680_v32 = vpop.permute.xlu0 %679  ;;  %v762_v34 = vsel %vm732_vm4, %v729_v6, %v663_v33 }
  0xd4   : > { %v785_v16 = vsel %vm765_vm5, %v746_v31, %v680_v32 }
  0xd5   : > { %1015 = vmatmul.mubr.bf16.gmra.mxu0 %v785_v16 }
  0xd6   : > { %1024 = vmatprep.mubr.bf16.mxu0 %v1518_v0  ;;  %v696_v37 = vpop.permute.xlu1 %695 }
  0xd7   : > { %v601_v23 = vpop.permute.xlu0 %600  ;;  %v809_v29 = vsel %vm765_vm5, %v762_v34, %v696_v37 }
  0xd8   : > { %1095 = vmatmul.mubr.bf16.gmra.mxu1 %v809_v29  ;;  %v715_v40 = vsel %vm699_vm3, %v1767_v43, %v601_v23  ;;  %v832_v43 = vlaneseq }
  0xd9   : > { %1104 = vmatprep.mubr.bf16.mxu1 %v1518_v0 }
  0xda   : > { %v617_v41 = vpop.permute.xlu1 %616  ;;  %v833_v0 = vshrl.u32 %v832_v43, 7 }
  0xdb   : > { %v649_v39 = vpop.permute.xlu0 %648  ;;  %v731_v47 = vsel %vm699_vm3, %v1778_v50, %v617_v41 }
  0xdc   : > { %v748_v42 = vsel %vm732_vm4, %v715_v40, %v649_v39  ;;  %v834_v51 = vsub.s32 0, %v833_v0  ;;  %v838_v52 = vsub.s32 1, %v833_v0 }
  0xde   : > { %v665_v35 = vpop.permute.xlu1 %664  ;;  %v1893_v53 = vrot.slane %v830_v12, %v834_v51  ;;  %v1896_v54 = vrot.slane %v830_v12, %v838_v52 }
  0xdf   : > { %v682_v44 = vpop.permute.xlu0 %681  ;;  %v764_v9 = vsel %vm732_vm4, %v731_v47, %v665_v35 }
  0xe0   : > { %v788_v46 = vsel %vm765_vm5, %v748_v42, %v682_v44 }
  0xe1   : > { %1025 = vmatmul.mubr.bf16.gmra.mxu0 %v788_v46 }
  0xe2   : > { %v698_v48 = vpop.permute.xlu1 %697 }
  0xe3   : > { %v812_v49 = vsel %vm765_vm5, %v764_v9, %v698_v48 }
  0xe4   : > { %1105 = vmatmul.mubr.bf16.gmra.mxu1 %v812_v49 }
 0x151   : > { %v956_v50 = vpop.f32.mrf.mxu0 }
 0x152   : > { %v957_v56 = vadd.f32 %v956_v50, %v1893_v53 }
 0x153   : > { %v958_v57 = vpop.f32.mrf.mxu0 }
 0x154   : > { %v1115_v58 = vmax.f32 %v957_v56, 0.0  ;;  %v959_v59 = vadd.f32 %v958_v57, %v1896_v54  ;;  %v1036_v62 = vpop.f32.mrf.mxu1 }
 0x155   : > { %v960_v7 = vpop.f32.mrf.mxu0  ;;  %v1037_v63 = vadd.f32 %v1036_v62, %v1893_v53 }
 0x156   : > { %1179 = vst [vmem:[%s1902_s13] sm:$0xff] %v1115_v58  ;;  %v1116_v60 = vmax.f32 %v959_v59, 0.0  ;;  %v961_v61 = vadd.f32 %v960_v7, %v1893_v53  ;;  %v1038_v4 = vpop.f32.mrf.mxu1 }
 0x157   : > { %v962_v38 = vpop.f32.mrf.mxu0  ;;  %v1147_v8 = vmax.f32 %v1037_v63, 0.0  ;;  %v1039_v11 = vadd.f32 %v1038_v4, %v1896_v54 }
 0x158   : > { %1180 = vst [vmem:[%s1902_s13 + $0x8] sm:$0xff] %v1116_v60  ;;  %v1117_v2 = vmax.f32 %v961_v61, 0.0  ;;  %v963_v3 = vadd.f32 %v962_v38, %v1896_v54  ;;  %v1040_v14 = vpop.f32.mrf.mxu1 }
 0x159   : > { %v966_v5 = vpop.f32.mrf.mxu0  ;;  %1211 = vst [vmem:[%s1902_s13 + $0x100] sm:$0xff] %v1147_v8  ;;  %v1148_v55 = vmax.f32 %v1039_v11, 0.0  ;;  %v1041_v18 = vadd.f32 %v1040_v14, %v1893_v53 }
 0x15a   : > { %1181 = vst [vmem:[%s1902_s13 + $0x10] sm:$0xff] %v1117_v2  ;;  %v1118_v45 = vmax.f32 %v963_v3, 0.0  ;;  %v967_v13 = vadd.f32 %v966_v5, %v1893_v53  ;;  %v1042_v20 = vpop.f32.mrf.mxu1 }
 0x15b   : > { %v968_v17 = vpop.f32.mrf.mxu0  ;;  %1212 = vst [vmem:[%s1902_s13 + $0x108] sm:$0xff] %v1148_v55  ;;  %v1149_v22 = vmax.f32 %v1041_v18, 0.0  ;;  %v1043_v24 = vadd.f32 %v1042_v20, %v1896_v54 }
 0x15c   : > { %1182 = vst [vmem:[%s1902_s13 + $0x18] sm:$0xff] %v1118_v45  ;;  %v1119_v36 = vmax.f32 %v967_v13, 0.0  ;;  %v969_v19 = vadd.f32 %v968_v17, %v1896_v54  ;;  %v1046_v26 = vpop.f32.mrf.mxu1 }
 0x15d   : > { %v970_v21 = vpop.f32.mrf.mxu0  ;;  %1213 = vst [vmem:[%s1902_s13 + $0x110] sm:$0xff] %v1149_v22  ;;  %v1150_v15 = vmax.f32 %v1043_v24, 0.0  ;;  %v1047_v10 = vadd.f32 %v1046_v26, %v1893_v53 }
 0x15e   : > { %1183 = vst [vmem:[%s1902_s13 + $0x20] sm:$0xff] %v1119_v36  ;;  %v1120_v1 = vmax.f32 %v969_v19, 0.0  ;;  %v971_v25 = vadd.f32 %v970_v21, %v1893_v53  ;;  %v1048_v31 = vpop.f32.mrf.mxu1 }
 0x15f   : > { %v972_v27 = vpop.f32.mrf.mxu0  ;;  %1214 = vst [vmem:[%s1902_s13 + $0x118] sm:$0xff] %v1150_v15  ;;  %v1151_v32 = vmax.f32 %v1047_v10, 0.0  ;;  %v1049_v16 = vadd.f32 %v1048_v31, %v1896_v54 }
 0x160   : > { %1184 = vst [vmem:[%s1902_s13 + $0x28] sm:$0xff] %v1120_v1  ;;  %v1121_v28 = vmax.f32 %v971_v25, 0.0  ;;  %v973_v30 = vadd.f32 %v972_v27, %v1896_v54  ;;  %v1050_v23 = vpop.f32.mrf.mxu1 }
 0x161   : > { %1215 = vst [vmem:[%s1902_s13 + $0x120] sm:$0xff] %v1151_v32  ;;  %v1152_v6 = vmax.f32 %v1049_v16, 0.0  ;;  %v1051_v34 = vadd.f32 %v1050_v23, %v1893_v53 }
 0x162   : > { %1185 = vst [vmem:[%s1902_s13 + $0x30] sm:$0xff] %v1121_v28  ;;  %v1122_v33 = vmax.f32 %v973_v30, 0.0  ;;  %v1052_v37 = vpop.f32.mrf.mxu1 }
 0x163   : > { %1216 = vst [vmem:[%s1902_s13 + $0x128] sm:$0xff] %v1152_v6  ;;  %v1153_v39 = vmax.f32 %v1051_v34, 0.0  ;;  %v1053_v40 = vadd.f32 %v1052_v37, %v1896_v54 }
 0x164   : > { %1186 = vst [vmem:[%s1902_s13 + $0x38] sm:$0xff] %v1122_v33 }
 0x165   : > { %v976_v29 = vpop.f32.mrf.mxu0  ;;  %1217 = vst [vmem:[%s1902_s13 + $0x130] sm:$0xff] %v1153_v39  ;;  %v1154_v44 = vmax.f32 %v1053_v40, 0.0 }
 0x166   : > { %v977_v41 = vadd.f32 %v976_v29, %v1893_v53 }
 0x167   : > { %v978_v42 = vpop.f32.mrf.mxu0  ;;  %1218 = vst [vmem:[%s1902_s13 + $0x138] sm:$0xff] %v1154_v44 }
 0x168   : > { %v1123_v46 = vmax.f32 %v977_v41, 0.0  ;;  %v979_v35 = vadd.f32 %v978_v42, %v1896_v54  ;;  %v1056_v49 = vpop.f32.mrf.mxu1 }
 0x169   : > { %v980_v47 = vpop.f32.mrf.mxu0  ;;  %v1057_v0 = vadd.f32 %v1056_v49, %v1893_v53 }
 0x16a   : > { %1187 = vst [vmem:[%s1902_s13 + $0x40] sm:$0xff] %v1123_v46  ;;  %v1124_v9 = vmax.f32 %v979_v35, 0.0  ;;  %v981_v48 = vadd.f32 %v980_v47, %v1893_v53  ;;  %v1058_v52 = vpop.f32.mrf.mxu1 }
 0x16b   : > { %v982_v43 = vpop.f32.mrf.mxu0  ;;  %v1155_v50 = vmax.f32 %v1057_v0, 0.0  ;;  %v1059_v56 = vadd.f32 %v1058_v52, %v1896_v54 }
 0x16c   : > { %1188 = vst [vmem:[%s1902_s13 + $0x48] sm:$0xff] %v1124_v9  ;;  %v1125_v51 = vmax.f32 %v981_v48, 0.0  ;;  %v983_v12 = vadd.f32 %v982_v43, %v1896_v54  ;;  %v1060_v58 = vpop.f32.mrf.mxu1 }
 0x16d   : > { %1219 = vst [vmem:[%s1902_s13 + $0x140] sm:$0xff] %v1155_v50  ;;  %v1156_v59 = vmax.f32 %v1059_v56, 0.0  ;;  %v1061_v7 = vadd.f32 %v1060_v58, %v1893_v53 }
 0x16e   : > { %1189 = vst [vmem:[%s1902_s13 + $0x50] sm:$0xff] %v1125_v51  ;;  %v1126_v57 = vmax.f32 %v983_v12, 0.0  ;;  %v1062_v60 = vpop.f32.mrf.mxu1 }
 0x16f   : > { %1220 = vst [vmem:[%s1902_s13 + $0x148] sm:$0xff] %v1156_v59  ;;  %v1157_v62 = vmax.f32 %v1061_v7, 0.0  ;;  %v1063_v38 = vadd.f32 %v1062_v60, %v1896_v54 }
 0x170   : > { %1190 = vst [vmem:[%s1902_s13 + $0x58] sm:$0xff] %v1126_v57 }
 0x171   : > { %v986_v61 = vpop.f32.mrf.mxu0  ;;  %1221 = vst [vmem:[%s1902_s13 + $0x150] sm:$0xff] %v1157_v62  ;;  %v1158_v3 = vmax.f32 %v1063_v38, 0.0 }
 0x172   : > { %v987_v63 = vadd.f32 %v986_v61, %v1893_v53 }
 0x173   : > { %v988_v2 = vpop.f32.mrf.mxu0  ;;  %1222 = vst [vmem:[%s1902_s13 + $0x158] sm:$0xff] %v1158_v3 }
 0x174   : > { %v1127_v4 = vmax.f32 %v987_v63, 0.0  ;;  %v989_v5 = vadd.f32 %v988_v2, %v1896_v54  ;;  %v1066_v13 = vpop.f32.mrf.mxu1 }
 0x175   : > { %v990_v8 = vpop.f32.mrf.mxu0  ;;  %v1067_v17 = vadd.f32 %v1066_v13, %v1893_v53 }
 0x176   : > { %1191 = vst [vmem:[%s1902_s13 + $0x60] sm:$0xff] %v1127_v4  ;;  %v1128_v11 = vmax.f32 %v989_v5, 0.0  ;;  %v991_v45 = vadd.f32 %v990_v8, %v1893_v53  ;;  %v1068_v36 = vpop.f32.mrf.mxu1 }
 0x177   : > { %v992_v14 = vpop.f32.mrf.mxu0  ;;  %v1159_v19 = vmax.f32 %v1067_v17, 0.0  ;;  %v1069_v20 = vadd.f32 %v1068_v36, %v1896_v54 }
 0x178   : > { %1192 = vst [vmem:[%s1902_s13 + $0x68] sm:$0xff] %v1128_v11  ;;  %v1129_v55 = vmax.f32 %v991_v45, 0.0  ;;  %v993_v18 = vadd.f32 %v992_v14, %v1896_v54  ;;  %v1070_v22 = vpop.f32.mrf.mxu1 }
 0x179   : > { %1223 = vst [vmem:[%s1902_s13 + $0x160] sm:$0xff] %v1159_v19  ;;  %v1160_v24 = vmax.f32 %v1069_v20, 0.0  ;;  %v1071_v1 = vadd.f32 %v1070_v22, %v1893_v53 }
 0x17a   : > { %1193 = vst [vmem:[%s1902_s13 + $0x70] sm:$0xff] %v1129_v55  ;;  %v1130_v21 = vmax.f32 %v993_v18, 0.0  ;;  %v1072_v25 = vpop.f32.mrf.mxu1 }
 0x17b   : > { %1224 = vst [vmem:[%s1902_s13 + $0x168] sm:$0xff] %v1160_v24  ;;  %v1161_v27 = vmax.f32 %v1071_v1, 0.0  ;;  %v1073_v15 = vadd.f32 %v1072_v25, %v1896_v54 }
 0x17c   : > { %1194 = vst [vmem:[%s1902_s13 + $0x78] sm:$0xff] %v1130_v21 }
 0x17d   : > { %v996_v26 = vpop.f32.mrf.mxu0  ;;  %1225 = vst [vmem:[%s1902_s13 + $0x170] sm:$0xff] %v1161_v27  ;;  %v1162_v30 = vmax.f32 %v1073_v15, 0.0 }
 0x17e   : > { %v997_v10 = vadd.f32 %v996_v26, %v1893_v53 }
 0x17f   : > { %v998_v28 = vpop.f32.mrf.mxu0  ;;  %1226 = vst [vmem:[%s1902_s13 + $0x178] sm:$0xff] %v1162_v30 }
 0x180   : > { %v1131_v31 = vmax.f32 %v997_v10, 0.0  ;;  %v999_v32 = vadd.f32 %v998_v28, %v1896_v54  ;;  %v1076_v6 = vpop.f32.mrf.mxu1 }
 0x181   : > { %v1000_v16 = vpop.f32.mrf.mxu0  ;;  %v1077_v37 = vadd.f32 %v1076_v6, %v1893_v53 }
 0x182   : > { %1195 = vst [vmem:[%s1902_s13 + $0x80] sm:$0xff] %v1131_v31  ;;  %v1132_v33 = vmax.f32 %v999_v32, 0.0  ;;  %v1001_v23 = vadd.f32 %v1000_v16, %v1893_v53  ;;  %v1078_v40 = vpop.f32.mrf.mxu1 }
 0x183   : > { %v1002_v34 = vpop.f32.mrf.mxu0  ;;  %v1163_v41 = vmax.f32 %v1077_v37, 0.0  ;;  %v1079_v42 = vadd.f32 %v1078_v40, %v1896_v54 }
 0x184   : > { %1196 = vst [vmem:[%s1902_s13 + $0x88] sm:$0xff] %v1132_v33  ;;  %v1133_v29 = vmax.f32 %v1001_v23, 0.0  ;;  %v1003_v39 = vadd.f32 %v1002_v34, %v1896_v54  ;;  %v1080_v46 = vpop.f32.mrf.mxu1 }
 0x185   : > { %1227 = vst [vmem:[%s1902_s13 + $0x180] sm:$0xff] %v1163_v41  ;;  %v1164_v35 = vmax.f32 %v1079_v42, 0.0  ;;  %v1081_v47 = vadd.f32 %v1080_v46, %v1893_v53 }
 0x186   : > { %1197 = vst [vmem:[%s1902_s13 + $0x90] sm:$0xff] %v1133_v29  ;;  %v1134_v44 = vmax.f32 %v1003_v39, 0.0  ;;  %v1082_v9 = vpop.f32.mrf.mxu1 }
 0x187   : > { %1228 = vst [vmem:[%s1902_s13 + $0x188] sm:$0xff] %v1164_v35  ;;  %v1165_v49 = vmax.f32 %v1081_v47, 0.0  ;;  %v1083_v43 = vadd.f32 %v1082_v9, %v1896_v54 }
 0x188   : > { %1198 = vst [vmem:[%s1902_s13 + $0x98] sm:$0xff] %v1134_v44 }
 0x189   : > { %v1006_v48 = vpop.f32.mrf.mxu0  ;;  %1229 = vst [vmem:[%s1902_s13 + $0x190] sm:$0xff] %v1165_v49  ;;  %v1166_v12 = vmax.f32 %v1083_v43, 0.0 }
 0x18a   : > { %v1007_v0 = vadd.f32 %v1006_v48, %v1893_v53 }
 0x18b   : > { %v1008_v51 = vpop.f32.mrf.mxu0  ;;  %1230 = vst [vmem:[%s1902_s13 + $0x198] sm:$0xff] %v1166_v12 }
 0x18c   : > { %v1135_v52 = vmax.f32 %v1007_v0, 0.0  ;;  %v1009_v50 = vadd.f32 %v1008_v51, %v1896_v54  ;;  %v1086_v59 = vpop.f32.mrf.mxu1 }
 0x18d   : > { %v1010_v56 = vpop.f32.mrf.mxu0  ;;  %v1087_v60 = vadd.f32 %v1086_v59, %v1893_v53 }
 0x18e   : > { %1199 = vst [vmem:[%s1902_s13 + $0xa0] sm:$0xff] %v1135_v52  ;;  %v1136_v57 = vmax.f32 %v1009_v50, 0.0  ;;  %v1011_v58 = vadd.f32 %v1010_v56, %v1893_v53  ;;  %v1088_v38 = vpop.f32.mrf.mxu1 }
 0x18f   : > { %v1012_v7 = vpop.f32.mrf.mxu0  ;;  %v1167_v63 = vmax.f32 %v1087_v60, 0.0  ;;  %v1089_v2 = vadd.f32 %v1088_v38, %v1896_v54 }
 0x190   : > { %1200 = vst [vmem:[%s1902_s13 + $0xa8] sm:$0xff] %v1136_v57  ;;  %v1137_v61 = vmax.f32 %v1011_v58, 0.0  ;;  %v1013_v62 = vadd.f32 %v1012_v7, %v1896_v54  ;;  %v1090_v4 = vpop.f32.mrf.mxu1 }
 0x191   : > { %1231 = vst [vmem:[%s1902_s13 + $0x1a0] sm:$0xff] %v1167_v63  ;;  %v1168_v5 = vmax.f32 %v1089_v2, 0.0  ;;  %v1091_v8 = vadd.f32 %v1090_v4, %v1893_v53 }
 0x192   : > { %1201 = vst [vmem:[%s1902_s13 + $0xb0] sm:$0xff] %v1137_v61  ;;  %v1138_v3 = vmax.f32 %v1013_v62, 0.0  ;;  %v1092_v11 = vpop.f32.mrf.mxu1 }
 0x193   : > { %1232 = vst [vmem:[%s1902_s13 + $0x1a8] sm:$0xff] %v1168_v5  ;;  %v1169_v13 = vmax.f32 %v1091_v8, 0.0  ;;  %v1093_v14 = vadd.f32 %v1092_v11, %v1896_v54 }
 0x194   : > { %1202 = vst [vmem:[%s1902_s13 + $0xb8] sm:$0xff] %v1138_v3 }
 0x195   : > { %v1016_v45 = vpop.f32.mrf.mxu0  ;;  %1233 = vst [vmem:[%s1902_s13 + $0x1b0] sm:$0xff] %v1169_v13  ;;  %v1170_v18 = vmax.f32 %v1093_v14, 0.0 }
 0x196   : > { %v1017_v17 = vadd.f32 %v1016_v45, %v1893_v53 }
 0x197   : > { %v1018_v55 = vpop.f32.mrf.mxu0  ;;  %1234 = vst [vmem:[%s1902_s13 + $0x1b8] sm:$0xff] %v1170_v18 }
 0x198   : > { %v1139_v36 = vmax.f32 %v1017_v17, 0.0  ;;  %v1019_v19 = vadd.f32 %v1018_v55, %v1896_v54  ;;  %v1096_v24 = vpop.f32.mrf.mxu1 }
 0x199   : > { %v1020_v20 = vpop.f32.mrf.mxu0  ;;  %v1097_v25 = vadd.f32 %v1096_v24, %v1893_v53 }
 0x19a   : > { %1203 = vst [vmem:[%s1902_s13 + $0xc0] sm:$0xff] %v1139_v36  ;;  %v1140_v21 = vmax.f32 %v1019_v19, 0.0  ;;  %v1021_v22 = vadd.f32 %v1020_v20, %v1893_v53  ;;  %v1098_v15 = vpop.f32.mrf.mxu1 }
 0x19b   : > { %v1022_v1 = vpop.f32.mrf.mxu0  ;;  %v1171_v10 = vmax.f32 %v1097_v25, 0.0  ;;  %v1099_v28 = vadd.f32 %v1098_v15, %v1896_v54 }
 0x19c   : > { %1204 = vst [vmem:[%s1902_s13 + $0xc8] sm:$0xff] %v1140_v21  ;;  %v1141_v26 = vmax.f32 %v1021_v22, 0.0  ;;  %v1023_v27 = vadd.f32 %v1022_v1, %v1896_v54  ;;  %v1100_v31 = vpop.f32.mrf.mxu1 }
 0x19d   : > { %1235 = vst [vmem:[%s1902_s13 + $0x1c0] sm:$0xff] %v1171_v10  ;;  %v1172_v32 = vmax.f32 %v1099_v28, 0.0  ;;  %v1101_v16 = vadd.f32 %v1100_v31, %v1893_v53 }
 0x19e   : > { %1205 = vst [vmem:[%s1902_s13 + $0xd0] sm:$0xff] %v1141_v26  ;;  %v1142_v30 = vmax.f32 %v1023_v27, 0.0  ;;  %v1102_v33 = vpop.f32.mrf.mxu1 }
 0x19f   : > { %1236 = vst [vmem:[%s1902_s13 + $0x1c8] sm:$0xff] %v1172_v32  ;;  %v1173_v6 = vmax.f32 %v1101_v16, 0.0  ;;  %v1103_v34 = vadd.f32 %v1102_v33, %v1896_v54 }
 0x1a0   : > { %1206 = vst [vmem:[%s1902_s13 + $0xd8] sm:$0xff] %v1142_v30 }
 0x1a1   : > { %v1026_v23 = vpop.f32.mrf.mxu0  ;;  %1237 = vst [vmem:[%s1902_s13 + $0x1d0] sm:$0xff] %v1173_v6  ;;  %v1174_v39 = vmax.f32 %v1103_v34, 0.0 }
 0x1a2   : > { %v1027_v37 = vadd.f32 %v1026_v23, %v1893_v53 }
 0x1a3   : > { %v1028_v29 = vpop.f32.mrf.mxu0  ;;  %1238 = vst [vmem:[%s1902_s13 + $0x1d8] sm:$0xff] %v1174_v39 }
 0x1a4   : > { %v1143_v40 = vmax.f32 %v1027_v37, 0.0  ;;  %v1029_v41 = vadd.f32 %v1028_v29, %v1896_v54  ;;  %v1106_v35 = vpop.f32.mrf.mxu1 }
 0x1a5   : > { %v1030_v42 = vpop.f32.mrf.mxu0  ;;  %v1107_v9 = vadd.f32 %v1106_v35, %v1893_v53 }
 0x1a6   : > { %1207 = vst [vmem:[%s1902_s13 + $0xe0] sm:$0xff] %v1143_v40  ;;  %v1144_v44 = vmax.f32 %v1029_v41, 0.0  ;;  %v1031_v46 = vadd.f32 %v1030_v42, %v1893_v53  ;;  %v1108_v43 = vpop.f32.mrf.mxu1 }
 0x1a7   : > { %v1032_v47 = vpop.f32.mrf.mxu0  ;;  %v1175_v0 = vmax.f32 %v1107_v9, 0.0  ;;  %v1109_v51 = vadd.f32 %v1108_v43, %v1896_v54 }
 0x1a8   : > { %1208 = vst [vmem:[%s1902_s13 + $0xe8] sm:$0xff] %v1144_v44  ;;  %v1145_v48 = vmax.f32 %v1031_v46, 0.0  ;;  %v1033_v49 = vadd.f32 %v1032_v47, %v1896_v54  ;;  %v1110_v52 = vpop.f32.mrf.mxu1 }
 0x1a9   : > { %1239 = vst [vmem:[%s1902_s13 + $0x1e0] sm:$0xff] %v1175_v0  ;;  %v1176_v50 = vmax.f32 %v1109_v51, 0.0  ;;  %v1111_v56 = vadd.f32 %v1110_v52, %v1893_v53 }
 0x1aa   : > { %1209 = vst [vmem:[%s1902_s13 + $0xf0] sm:$0xff] %v1145_v48  ;;  %v1146_v12 = vmax.f32 %v1033_v49, 0.0  ;;  %v1112_v57 = vpop.f32.mrf.mxu1 }
 0x1ab   : > { %1240 = vst [vmem:[%s1902_s13 + $0x1e8] sm:$0xff] %v1176_v50  ;;  %v1177_v58 = vmax.f32 %v1111_v56, 0.0  ;;  %v1113_v59 = vadd.f32 %v1112_v57, %v1896_v54 }
 0x1ac   : > { %1210 = vst [vmem:[%s1902_s13 + $0xf8] sm:$0xff] %v1146_v12 }
 0x1ad   : > { %1241 = vst [vmem:[%s1902_s13 + $0x1f0] sm:$0xff] %v1177_v58  ;;  %v1178_v7 = vmax.f32 %v1113_v59, 0.0 }
 0x1af   : > { %1242 = vst [vmem:[%s1902_s13 + $0x1f8] sm:$0xff] %v1178_v7 }
 0x1b0 PF: > { %s14_s17 = sadd.s32 1, %s1516_s17   ;;  %s2047_s15 = smov %s1512_s16 }
 0x1b1   : > { %p11_p5 = scmp.ge.s32.totalorder %s14_s17, 4   ;;  %s2048_s16 = smov %s2050_s1 }
 0x1b3   :  { %13 = sbr.rel (!%p11_p5) target bundleno = 2 (0x2), region = 69 }

</bundles_post_ra>
